<compile_context>
chip_gen: v7x
topology: tpu7x:2x2x1
jax: 0.10.0
libtpu: 0.0.40
codegen_flags: <defaults>
</compile_context>

<pallas_src>
import functools

import jax
import jax.numpy as jnp
from jax.experimental import pallas as pl
from jax.experimental.pallas import tpu as pltpu


# ---------------------------------------------------------------------------
# Fused Pallas kernel (B_blk batch elements per grid step)
# ---------------------------------------------------------------------------
def _fused_actor_kernel(A, x_ref, w1_ref, b1_ref, w2_ref, b2_ref,
                        v1_ref, c1_ref, v2_ref, c2_ref, o_ref):
    """Fused TimeATActor head for a block of B_blk batch elements.

    x_ref  : (B_blk, T_blk, D) block of the net output; only rows [0, A) along
             the time axis are used, which realises logits[:, :-1, :] without a
             wrapper-side copy (T_blk == A when A is sublane-aligned).
    v1_ref : (A, M, H_merge) -- merge first-layer weight pre-reshaped so the
             flatten(-2) becomes A independent (B_blk, M) @ (M, H_merge) matmuls.
    o_ref  : (B_blk, A) output block (softmax probabilities), lane-dense 2-D.
    """
    w1 = w1_ref[...]
    b1 = b1_ref[...]
    w2 = w2_ref[...]
    b2 = b2_ref[...]

    # Per-action pipeline, statically unrolled (A == action_shape is small).
    # Each iteration is a full-sublane-occupancy matmul over B_blk rows; the
    # merge partials are independent so the MXU can pipeline them.
    parts = []
    for a in range(A):
        x_a = x_ref[:, a, :].astype(jnp.float32)                       # (B_blk, D)
        h_a = jnp.dot(x_a, w1, preferred_element_type=jnp.float32) + b1
        h_a = jnp.maximum(h_a, 0.0)                                    # (B_blk, H_per)
        y_a = jnp.dot(h_a, w2, preferred_element_type=jnp.float32) + b2
        y_a = jnp.maximum(y_a, 0.0)                                    # (B_blk, M)
        parts.append(jnp.dot(y_a, v1_ref[a],
                             preferred_element_type=jnp.float32))      # (B_blk, H_merge)

    # Balanced tree-add of the A merge partials (no serial accumulation chain).
    while len(parts) > 1:
        nxt = [parts[i] + parts[i + 1] for i in range(0, len(parts) - 1, 2)]
        if len(parts) % 2:
            nxt.append(parts[-1])
        parts = nxt

    h2 = jnp.maximum(parts[0] + c1_ref[...], 0.0)                      # (B_blk, H_merge)

    # Merge layer 2 (no activation) + softmax over the action dim.
    logits = (jnp.dot(h2, v2_ref[...], preferred_element_type=jnp.float32)
              + c2_ref[...])                                           # (B_blk, A)
    m = jnp.max(logits, axis=-1, keepdims=True)
    e = jnp.exp(logits - m)
    denom = jnp.sum(e, axis=-1, keepdims=True)
    r = pl.reciprocal(denom, approx=True)                              # EUP slot
    r = r * (2.0 - denom * r)                                          # Newton step -> 1e-5 ok
    o_ref[...] = (e * r).astype(o_ref.dtype)


# ---------------------------------------------------------------------------
# Batch-block selection
# ---------------------------------------------------------------------------
def _pick_b_blk(B, target=256):
    """Largest multiple-of-8 divisor of B, capped so the grid keeps >= 2 steps
    (feeds both v7x TensorCores); falls back to the whole batch in one step
    (B_blk == B keeps the output block shape legal for any B)."""
    cap = min(target, B // 2)
    best, d = 0, 8
    while d <= cap:
        if B % d == 0:
            best = d
        d += 8
    return best if best > 0 else B


def _weight_spec(shape):
    ndim = len(shape)
    # Constant index_map -> never re-fetched; single-buffer to save VMEM/descriptors.
    return pl.BlockSpec(shape, lambda b: (0,) * ndim, pipeline_mode=pl.Buffered(1))


# ---------------------------------------------------------------------------
# TimeATActor forward (Pallas-backed)
# ---------------------------------------------------------------------------
def time_at_actor_forward(net_logits, hidden, params, *, b_blk_target=256):
    """net_logits: (B, T, D) output of self.net.  Returns (probs (B, A), hidden)."""
    B, T, D = net_logits.shape
    A = T - 1                                    # action_shape == T - 1
    H_per = params["w1"].shape[1]
    M = params["w2"].shape[1]
    H_merge = params["v1"].shape[1]
    assert params["v1"].shape[0] == A * M

    # Contiguous, one-time reshape of the merge first-layer weight (free).
    v1_r = params["v1"].reshape(A, M, H_merge)

    # logits[:, :-1, :] via the block extent when A is sublane-aligned; otherwise
    # DMA all T rows and the kernel simply never touches row A..T-1.
    T_blk = A if (A % 8 == 0) else T

    B_blk = _pick_b_blk(B, b_blk_target)
    n_steps = B // B_blk

    # Explicit VMEM budget (x/out double-buffered, weights single-buffered) with
    # headroom; stays well inside v7x's 64 MiB physical VMEM at these shapes.
    est = 4 * (2 * B_blk * T_blk * D + 2 * B_blk * A
               + D * H_per + H_per + H_per * M + M
               + A * M * H_merge + H_merge + H_merge * A + A)
    vmem_limit = int(min(48 * 2**20, max(16 * 2**20, 4 * est)))

    kernel = functools.partial(_fused_actor_kernel, A)

    probs = pl.pallas_call(
        kernel,
        out_shape=jax.ShapeDtypeStruct((B, A), jnp.float32),
        grid=(n_steps,),
        in_specs=[
            pl.BlockSpec((B_blk, T_blk, D), lambda b: (b, 0, 0)),      # net output slice
            _weight_spec((D, H_per)),                                  # per_output W1
            _weight_spec((1, H_per)),                                  # per_output b1
            _weight_spec((H_per, M)),                                  # per_output W2
            _weight_spec((1, M)),                                      # per_output b2
            _weight_spec((A, M, H_merge)),                             # merge V1 (reshaped)
            _weight_spec((1, H_merge)),                                # merge c1
            _weight_spec((H_merge, A)),                                # merge V2
            _weight_spec((1, A)),                                      # merge c2
        ],
        out_specs=pl.BlockSpec((B_blk, A), lambda b: (b, 0)),
        compiler_params=pltpu.CompilerParams(
            dimension_semantics=("parallel",),   # shards batch blocks across v7x's 2 TCs
            vmem_limit_bytes=vmem_limit,
        ),
    )(net_logits, params["w1"], params["b1"], params["w2"], params["b2"],
      v1_r, params["c1"], params["v2"], params["c2"])

    return probs, hidden


# ---------------------------------------------------------------------------
# Deterministic parameter init (shapes implied by __init__)
# ---------------------------------------------------------------------------
def init_params(key, D, H_per, M, A, H_merge):
    ks = jax.random.split(key, 8)

    def lin(k, fan_in, fan_out):
        lim = 1.0 / jnp.sqrt(fan_in)
        return jax.random.uniform(k, (fan_in, fan_out), jnp.float32, -lim, lim)

    return {
        # per_output_net: Linear(D,H_per) + ReLU, Linear(H_per,M) + ReLU
        "w1": lin(ks[0], D, H_per),
        "b1": jax.random.uniform(ks[1], (1, H_per), jnp.float32, -0.1, 0.1),
        "w2": lin(ks[2], H_per, M),
        "b2": jax.random.uniform(ks[3], (1, M), jnp.float32, -0.1, 0.1),
        # merge: Linear(A*M, H_merge) + ReLU, Linear(H_merge, A)
        "v1": lin(ks[4], A * M, H_merge),
        "c1": jax.random.uniform(ks[5], (1, H_merge), jnp.float32, -0.1, 0.1),
        "v2": lin(ks[6], H_merge, A),
        "c2": jax.random.uniform(ks[7], (1, A), jnp.float32, -0.1, 0.1),
    }


def reference_forward(net_logits, params):
    """Pure-JAX reference of the same forward (sanity check)."""
    B, T, D = net_logits.shape
    A = T - 1
    x = net_logits[:, :-1, :].reshape(B * A, D)
    h = jnp.maximum(x @ params["w1"] + params["b1"], 0.0)
    y = jnp.maximum(h @ params["w2"] + params["b2"], 0.0)
    y = y.reshape(B, -1)
    h2 = jnp.maximum(y @ params["v1"] + params["c1"], 0.0)
    logits = h2 @ params["v2"] + params["c2"]
    return jax.nn.softmax(logits, axis=-1)


if __name__ == "__main__":
    # Small shapes consistent with the module:
    B, T, D = 16, 9, 32         # net output: (batch, time, net.output_dim)
    A = T - 1                   # action_shape (merge input = before_merge_dim * A)
    M = 16                      # model_config.actor.before_merge_dim
    H_PER, H_MERGE = 32, 32     # hidden sizes of the two MLPs

    key = jax.random.PRNGKey(0)
    k_obs, k_par = jax.random.split(key)

    net_logits = jax.random.normal(k_obs, (B, T, D), jnp.float32)
    hidden = None
    params = init_params(k_par, D, H_PER, M, A, H_MERGE)

    probs, hidden_out = time_at_actor_forward(net_logits, hidden, params)
    probs = jax.block_until_ready(probs)

    ref = reference_forward(net_logits, params)
    assert probs.shape == (B, A)
    assert jnp.allclose(probs, ref, atol=1e-5, rtol=1e-5)
    assert jnp.allclose(jnp.sum(probs, axis=-1), 1.0, atol=1e-5)

    print("KERNEL_OK")
</pallas_src>

<mosaic_0001>
module attributes {stable_mosaic.version = 11 : i64} {
  func.func @_fused_actor_kernel(%arg0: i32, %arg1: memref<8x8x32xf32, #tpu.memory_space<vmem>>, %arg2: memref<32x32xf32, #tpu.memory_space<vmem>>, %arg3: memref<1x32xf32, #tpu.memory_space<vmem>>, %arg4: memref<32x16xf32, #tpu.memory_space<vmem>>, %arg5: memref<1x16xf32, #tpu.memory_space<vmem>>, %arg6: memref<8x16x32xf32, #tpu.memory_space<vmem>>, %arg7: memref<1x32xf32, #tpu.memory_space<vmem>>, %arg8: memref<32x8xf32, #tpu.memory_space<vmem>>, %arg9: memref<1x8xf32, #tpu.memory_space<vmem>>, %arg10: memref<8x8xf32, #tpu.memory_space<vmem>>) attributes {dimension_semantics = [#tpu.dimension_semantics<parallel>], iteration_bounds = array<i64: 2>, scalar_prefetch = 0 : i64, scratch_operands = 0 : i64, tpu.core_type = #tpu.core_type<tc>, window_params = [{transform_indices = @transform_0, window_bounds = array<i64: 8, 8, 32>}, {pipeline_mode = #tpu.pipeline_mode<synchronous>, transform_indices = @transform_1, window_bounds = array<i64: 32, 32>}, {pipeline_mode = #tpu.pipeline_mode<synchronous>, transform_indices = @transform_2, window_bounds = array<i64: 1, 32>}, {pipeline_mode = #tpu.pipeline_mode<synchronous>, transform_indices = @transform_3, window_bounds = array<i64: 32, 16>}, {pipeline_mode = #tpu.pipeline_mode<synchronous>, transform_indices = @transform_4, window_bounds = array<i64: 1, 16>}, {pipeline_mode = #tpu.pipeline_mode<synchronous>, transform_indices = @transform_5, window_bounds = array<i64: 8, 16, 32>}, {pipeline_mode = #tpu.pipeline_mode<synchronous>, transform_indices = @transform_6, window_bounds = array<i64: 1, 32>}, {pipeline_mode = #tpu.pipeline_mode<synchronous>, transform_indices = @transform_7, window_bounds = array<i64: 32, 8>}, {pipeline_mode = #tpu.pipeline_mode<synchronous>, transform_indices = @transform_8, window_bounds = array<i64: 1, 8>}, {transform_indices = @transform_9, window_bounds = array<i64: 8, 8>}]} {
    %c0 = arith.constant 0 : index
    %c0_0 = arith.constant 0 : index
    %0 = vector.load %arg2[%c0, %c0_0] : memref<32x32xf32, #tpu.memory_space<vmem>>, vector<32x32xf32>
    %c0_1 = arith.constant 0 : index
    %c0_2 = arith.constant 0 : index
    %1 = vector.load %arg3[%c0_1, %c0_2] : memref<1x32xf32, #tpu.memory_space<vmem>>, vector<1x32xf32>
    %c0_3 = arith.constant 0 : index
    %c0_4 = arith.constant 0 : index
    %2 = vector.load %arg4[%c0_3, %c0_4] : memref<32x16xf32, #tpu.memory_space<vmem>>, vector<32x16xf32>
    %c0_5 = arith.constant 0 : index
    %c0_6 = arith.constant 0 : index
    %3 = vector.load %arg5[%c0_5, %c0_6] : memref<1x16xf32, #tpu.memory_space<vmem>>, vector<1x16xf32>
    %c0_7 = arith.constant 0 : index
    %c0_8 = arith.constant 0 : index
    %c0_9 = arith.constant 0 : index
    %4 = vector.load %arg1[%c0_7, %c0_8, %c0_9] : memref<8x8x32xf32, #tpu.memory_space<vmem>>, vector<8x1x32xf32>
    %5 = vector.shape_cast %4 : vector<8x1x32xf32> to vector<8x32xf32>
    %cst = arith.constant dense<0.000000e+00> : vector<8x32xf32>
    %6 = tpu.matmul %5, %0, %cst {dimension_numbers = #tpu.dot_dimension_numbers<[1], [0], [0], [1], [0, 0, 1, 1], [], []>} : vector<8x32xf32>, vector<32x32xf32>, vector<8x32xf32> -> vector<8x32xf32>
    %7 = vector.broadcast %1 : vector<1x32xf32> to vector<8x32xf32>
    %8 = arith.addf %6, %7 : vector<8x32xf32>
    %cst_10 = arith.constant 0.000000e+00 : f32
    %9 = vector.broadcast %cst_10 : f32 to vector<8x32xf32>
    %10 = arith.maximumf %8, %9 : vector<8x32xf32>
    %cst_11 = arith.constant dense<0.000000e+00> : vector<8x16xf32>
    %11 = tpu.matmul %10, %2, %cst_11 {dimension_numbers = #tpu.dot_dimension_numbers<[1], [0], [0], [1], [0, 0, 1, 1], [], []>} : vector<8x32xf32>, vector<32x16xf32>, vector<8x16xf32> -> vector<8x16xf32>
    %12 = vector.broadcast %3 : vector<1x16xf32> to vector<8x16xf32>
    %13 = arith.addf %11, %12 : vector<8x16xf32>
    %cst_12 = arith.constant 0.000000e+00 : f32
    %14 = vector.broadcast %cst_12 : f32 to vector<8x16xf32>
    %15 = arith.maximumf %13, %14 : vector<8x16xf32>
    %c0_13 = arith.constant 0 : index
    %c0_14 = arith.constant 0 : index
    %c0_15 = arith.constant 0 : index
    %16 = vector.load %arg6[%c0_13, %c0_14, %c0_15] : memref<8x16x32xf32, #tpu.memory_space<vmem>>, vector<1x16x32xf32>
    %17 = vector.shape_cast %16 : vector<1x16x32xf32> to vector<16x32xf32>
    %cst_16 = arith.constant dense<0.000000e+00> : vector<8x32xf32>
    %18 = tpu.matmul %15, %17, %cst_16 {dimension_numbers = #tpu.dot_dimension_numbers<[1], [0], [0], [1], [0, 0, 1, 1], [], []>} : vector<8x16xf32>, vector<16x32xf32>, vector<8x32xf32> -> vector<8x32xf32>
    %c0_17 = arith.constant 0 : index
    %c1 = arith.constant 1 : index
    %c0_18 = arith.constant 0 : index
    %19 = vector.load %arg1[%c0_17, %c1, %c0_18] : memref<8x8x32xf32, #tpu.memory_space<vmem>>, vector<8x1x32xf32>
    %20 = vector.shape_cast %19 : vector<8x1x32xf32> to vector<8x32xf32>
    %cst_19 = arith.constant dense<0.000000e+00> : vector<8x32xf32>
    %21 = tpu.matmul %20, %0, %cst_19 {dimension_numbers = #tpu.dot_dimension_numbers<[1], [0], [0], [1], [0, 0, 1, 1], [], []>} : vector<8x32xf32>, vector<32x32xf32>, vector<8x32xf32> -> vector<8x32xf32>
    %22 = vector.broadcast %1 : vector<1x32xf32> to vector<8x32xf32>
    %23 = arith.addf %21, %22 : vector<8x32xf32>
    %cst_20 = arith.constant 0.000000e+00 : f32
    %24 = vector.broadcast %cst_20 : f32 to vector<8x32xf32>
    %25 = arith.maximumf %23, %24 : vector<8x32xf32>
    %cst_21 = arith.constant dense<0.000000e+00> : vector<8x16xf32>
    %26 = tpu.matmul %25, %2, %cst_21 {dimension_numbers = #tpu.dot_dimension_numbers<[1], [0], [0], [1], [0, 0, 1, 1], [], []>} : vector<8x32xf32>, vector<32x16xf32>, vector<8x16xf32> -> vector<8x16xf32>
    %27 = vector.broadcast %3 : vector<1x16xf32> to vector<8x16xf32>
    %28 = arith.addf %26, %27 : vector<8x16xf32>
    %cst_22 = arith.constant 0.000000e+00 : f32
    %29 = vector.broadcast %cst_22 : f32 to vector<8x16xf32>
    %30 = arith.maximumf %28, %29 : vector<8x16xf32>
    %c1_23 = arith.constant 1 : index
    %c0_24 = arith.constant 0 : index
    %c0_25 = arith.constant 0 : index
    %31 = vector.load %arg6[%c1_23, %c0_24, %c0_25] : memref<8x16x32xf32, #tpu.memory_space<vmem>>, vector<1x16x32xf32>
    %32 = vector.shape_cast %31 : vector<1x16x32xf32> to vector<16x32xf32>
    %cst_26 = arith.constant dense<0.000000e+00> : vector<8x32xf32>
    %33 = tpu.matmul %30, %32, %cst_26 {dimension_numbers = #tpu.dot_dimension_numbers<[1], [0], [0], [1], [0, 0, 1, 1], [], []>} : vector<8x16xf32>, vector<16x32xf32>, vector<8x32xf32> -> vector<8x32xf32>
    %c0_27 = arith.constant 0 : index
    %c2 = arith.constant 2 : index
    %c0_28 = arith.constant 0 : index
    %34 = vector.load %arg1[%c0_27, %c2, %c0_28] : memref<8x8x32xf32, #tpu.memory_space<vmem>>, vector<8x1x32xf32>
    %35 = vector.shape_cast %34 : vector<8x1x32xf32> to vector<8x32xf32>
    %cst_29 = arith.constant dense<0.000000e+00> : vector<8x32xf32>
    %36 = tpu.matmul %35, %0, %cst_29 {dimension_numbers = #tpu.dot_dimension_numbers<[1], [0], [0], [1], [0, 0, 1, 1], [], []>} : vector<8x32xf32>, vector<32x32xf32>, vector<8x32xf32> -> vector<8x32xf32>
    %37 = vector.broadcast %1 : vector<1x32xf32> to vector<8x32xf32>
    %38 = arith.addf %36, %37 : vector<8x32xf32>
    %cst_30 = arith.constant 0.000000e+00 : f32
    %39 = vector.broadcast %cst_30 : f32 to vector<8x32xf32>
    %40 = arith.maximumf %38, %39 : vector<8x32xf32>
    %cst_31 = arith.constant dense<0.000000e+00> : vector<8x16xf32>
    %41 = tpu.matmul %40, %2, %cst_31 {dimension_numbers = #tpu.dot_dimension_numbers<[1], [0], [0], [1], [0, 0, 1, 1], [], []>} : vector<8x32xf32>, vector<32x16xf32>, vector<8x16xf32> -> vector<8x16xf32>
    %42 = vector.broadcast %3 : vector<1x16xf32> to vector<8x16xf32>
    %43 = arith.addf %41, %42 : vector<8x16xf32>
    %cst_32 = arith.constant 0.000000e+00 : f32
    %44 = vector.broadcast %cst_32 : f32 to vector<8x16xf32>
    %45 = arith.maximumf %43, %44 : vector<8x16xf32>
    %c2_33 = arith.constant 2 : index
    %c0_34 = arith.constant 0 : index
    %c0_35 = arith.constant 0 : index
    %46 = vector.load %arg6[%c2_33, %c0_34, %c0_35] : memref<8x16x32xf32, #tpu.memory_space<vmem>>, vector<1x16x32xf32>
    %47 = vector.shape_cast %46 : vector<1x16x32xf32> to vector<16x32xf32>
    %cst_36 = arith.constant dense<0.000000e+00> : vector<8x32xf32>
    %48 = tpu.matmul %45, %47, %cst_36 {dimension_numbers = #tpu.dot_dimension_numbers<[1], [0], [0], [1], [0, 0, 1, 1], [], []>} : vector<8x16xf32>, vector<16x32xf32>, vector<8x32xf32> -> vector<8x32xf32>
    %c0_37 = arith.constant 0 : index
    %c3 = arith.constant 3 : index
    %c0_38 = arith.constant 0 : index
    %49 = vector.load %arg1[%c0_37, %c3, %c0_38] : memref<8x8x32xf32, #tpu.memory_space<vmem>>, vector<8x1x32xf32>
    %50 = vector.shape_cast %49 : vector<8x1x32xf32> to vector<8x32xf32>
    %cst_39 = arith.constant dense<0.000000e+00> : vector<8x32xf32>
    %51 = tpu.matmul %50, %0, %cst_39 {dimension_numbers = #tpu.dot_dimension_numbers<[1], [0], [0], [1], [0, 0, 1, 1], [], []>} : vector<8x32xf32>, vector<32x32xf32>, vector<8x32xf32> -> vector<8x32xf32>
    %52 = vector.broadcast %1 : vector<1x32xf32> to vector<8x32xf32>
    %53 = arith.addf %51, %52 : vector<8x32xf32>
    %cst_40 = arith.constant 0.000000e+00 : f32
    %54 = vector.broadcast %cst_40 : f32 to vector<8x32xf32>
    %55 = arith.maximumf %53, %54 : vector<8x32xf32>
    %cst_41 = arith.constant dense<0.000000e+00> : vector<8x16xf32>
    %56 = tpu.matmul %55, %2, %cst_41 {dimension_numbers = #tpu.dot_dimension_numbers<[1], [0], [0], [1], [0, 0, 1, 1], [], []>} : vector<8x32xf32>, vector<32x16xf32>, vector<8x16xf32> -> vector<8x16xf32>
    %57 = vector.broadcast %3 : vector<1x16xf32> to vector<8x16xf32>
    %58 = arith.addf %56, %57 : vector<8x16xf32>
    %cst_42 = arith.constant 0.000000e+00 : f32
    %59 = vector.broadcast %cst_42 : f32 to vector<8x16xf32>
    %60 = arith.maximumf %58, %59 : vector<8x16xf32>
    %c3_43 = arith.constant 3 : index
    %c0_44 = arith.constant 0 : index
    %c0_45 = arith.constant 0 : index
    %61 = vector.load %arg6[%c3_43, %c0_44, %c0_45] : memref<8x16x32xf32, #tpu.memory_space<vmem>>, vector<1x16x32xf32>
    %62 = vector.shape_cast %61 : vector<1x16x32xf32> to vector<16x32xf32>
    %cst_46 = arith.constant dense<0.000000e+00> : vector<8x32xf32>
    %63 = tpu.matmul %60, %62, %cst_46 {dimension_numbers = #tpu.dot_dimension_numbers<[1], [0], [0], [1], [0, 0, 1, 1], [], []>} : vector<8x16xf32>, vector<16x32xf32>, vector<8x32xf32> -> vector<8x32xf32>
    %c0_47 = arith.constant 0 : index
    %c4 = arith.constant 4 : index
    %c0_48 = arith.constant 0 : index
    %64 = vector.load %arg1[%c0_47, %c4, %c0_48] : memref<8x8x32xf32, #tpu.memory_space<vmem>>, vector<8x1x32xf32>
    %65 = vector.shape_cast %64 : vector<8x1x32xf32> to vector<8x32xf32>
    %cst_49 = arith.constant dense<0.000000e+00> : vector<8x32xf32>
    %66 = tpu.matmul %65, %0, %cst_49 {dimension_numbers = #tpu.dot_dimension_numbers<[1], [0], [0], [1], [0, 0, 1, 1], [], []>} : vector<8x32xf32>, vector<32x32xf32>, vector<8x32xf32> -> vector<8x32xf32>
    %67 = vector.broadcast %1 : vector<1x32xf32> to vector<8x32xf32>
    %68 = arith.addf %66, %67 : vector<8x32xf32>
    %cst_50 = arith.constant 0.000000e+00 : f32
    %69 = vector.broadcast %cst_50 : f32 to vector<8x32xf32>
    %70 = arith.maximumf %68, %69 : vector<8x32xf32>
    %cst_51 = arith.constant dense<0.000000e+00> : vector<8x16xf32>
    %71 = tpu.matmul %70, %2, %cst_51 {dimension_numbers = #tpu.dot_dimension_numbers<[1], [0], [0], [1], [0, 0, 1, 1], [], []>} : vector<8x32xf32>, vector<32x16xf32>, vector<8x16xf32> -> vector<8x16xf32>
    %72 = vector.broadcast %3 : vector<1x16xf32> to vector<8x16xf32>
    %73 = arith.addf %71, %72 : vector<8x16xf32>
    %cst_52 = arith.constant 0.000000e+00 : f32
    %74 = vector.broadcast %cst_52 : f32 to vector<8x16xf32>
    %75 = arith.maximumf %73, %74 : vector<8x16xf32>
    %c4_53 = arith.constant 4 : index
    %c0_54 = arith.constant 0 : index
    %c0_55 = arith.constant 0 : index
    %76 = vector.load %arg6[%c4_53, %c0_54, %c0_55] : memref<8x16x32xf32, #tpu.memory_space<vmem>>, vector<1x16x32xf32>
    %77 = vector.shape_cast %76 : vector<1x16x32xf32> to vector<16x32xf32>
    %cst_56 = arith.constant dense<0.000000e+00> : vector<8x32xf32>
    %78 = tpu.matmul %75, %77, %cst_56 {dimension_numbers = #tpu.dot_dimension_numbers<[1], [0], [0], [1], [0, 0, 1, 1], [], []>} : vector<8x16xf32>, vector<16x32xf32>, vector<8x32xf32> -> vector<8x32xf32>
    %c0_57 = arith.constant 0 : index
    %c5 = arith.constant 5 : index
    %c0_58 = arith.constant 0 : index
    %79 = vector.load %arg1[%c0_57, %c5, %c0_58] : memref<8x8x32xf32, #tpu.memory_space<vmem>>, vector<8x1x32xf32>
    %80 = vector.shape_cast %79 : vector<8x1x32xf32> to vector<8x32xf32>
    %cst_59 = arith.constant dense<0.000000e+00> : vector<8x32xf32>
    %81 = tpu.matmul %80, %0, %cst_59 {dimension_numbers = #tpu.dot_dimension_numbers<[1], [0], [0], [1], [0, 0, 1, 1], [], []>} : vector<8x32xf32>, vector<32x32xf32>, vector<8x32xf32> -> vector<8x32xf32>
    %82 = vector.broadcast %1 : vector<1x32xf32> to vector<8x32xf32>
    %83 = arith.addf %81, %82 : vector<8x32xf32>
    %cst_60 = arith.constant 0.000000e+00 : f32
    %84 = vector.broadcast %cst_60 : f32 to vector<8x32xf32>
    %85 = arith.maximumf %83, %84 : vector<8x32xf32>
    %cst_61 = arith.constant dense<0.000000e+00> : vector<8x16xf32>
    %86 = tpu.matmul %85, %2, %cst_61 {dimension_numbers = #tpu.dot_dimension_numbers<[1], [0], [0], [1], [0, 0, 1, 1], [], []>} : vector<8x32xf32>, vector<32x16xf32>, vector<8x16xf32> -> vector<8x16xf32>
    %87 = vector.broadcast %3 : vector<1x16xf32> to vector<8x16xf32>
    %88 = arith.addf %86, %87 : vector<8x16xf32>
    %cst_62 = arith.constant 0.000000e+00 : f32
    %89 = vector.broadcast %cst_62 : f32 to vector<8x16xf32>
    %90 = arith.maximumf %88, %89 : vector<8x16xf32>
    %c5_63 = arith.constant 5 : index
    %c0_64 = arith.constant 0 : index
    %c0_65 = arith.constant 0 : index
    %91 = vector.load %arg6[%c5_63, %c0_64, %c0_65] : memref<8x16x32xf32, #tpu.memory_space<vmem>>, vector<1x16x32xf32>
    %92 = vector.shape_cast %91 : vector<1x16x32xf32> to vector<16x32xf32>
    %cst_66 = arith.constant dense<0.000000e+00> : vector<8x32xf32>
    %93 = tpu.matmul %90, %92, %cst_66 {dimension_numbers = #tpu.dot_dimension_numbers<[1], [0], [0], [1], [0, 0, 1, 1], [], []>} : vector<8x16xf32>, vector<16x32xf32>, vector<8x32xf32> -> vector<8x32xf32>
    %c0_67 = arith.constant 0 : index
    %c6 = arith.constant 6 : index
    %c0_68 = arith.constant 0 : index
    %94 = vector.load %arg1[%c0_67, %c6, %c0_68] : memref<8x8x32xf32, #tpu.memory_space<vmem>>, vector<8x1x32xf32>
    %95 = vector.shape_cast %94 : vector<8x1x32xf32> to vector<8x32xf32>
    %cst_69 = arith.constant dense<0.000000e+00> : vector<8x32xf32>
    %96 = tpu.matmul %95, %0, %cst_69 {dimension_numbers = #tpu.dot_dimension_numbers<[1], [0], [0], [1], [0, 0, 1, 1], [], []>} : vector<8x32xf32>, vector<32x32xf32>, vector<8x32xf32> -> vector<8x32xf32>
    %97 = vector.broadcast %1 : vector<1x32xf32> to vector<8x32xf32>
    %98 = arith.addf %96, %97 : vector<8x32xf32>
    %cst_70 = arith.constant 0.000000e+00 : f32
    %99 = vector.broadcast %cst_70 : f32 to vector<8x32xf32>
    %100 = arith.maximumf %98, %99 : vector<8x32xf32>
    %cst_71 = arith.constant dense<0.000000e+00> : vector<8x16xf32>
    %101 = tpu.matmul %100, %2, %cst_71 {dimension_numbers = #tpu.dot_dimension_numbers<[1], [0], [0], [1], [0, 0, 1, 1], [], []>} : vector<8x32xf32>, vector<32x16xf32>, vector<8x16xf32> -> vector<8x16xf32>
    %102 = vector.broadcast %3 : vector<1x16xf32> to vector<8x16xf32>
    %103 = arith.addf %101, %102 : vector<8x16xf32>
    %cst_72 = arith.constant 0.000000e+00 : f32
    %104 = vector.broadcast %cst_72 : f32 to vector<8x16xf32>
    %105 = arith.maximumf %103, %104 : vector<8x16xf32>
    %c6_73 = arith.constant 6 : index
    %c0_74 = arith.constant 0 : index
    %c0_75 = arith.constant 0 : index
    %106 = vector.load %arg6[%c6_73, %c0_74, %c0_75] : memref<8x16x32xf32, #tpu.memory_space<vmem>>, vector<1x16x32xf32>
    %107 = vector.shape_cast %106 : vector<1x16x32xf32> to vector<16x32xf32>
    %cst_76 = arith.constant dense<0.000000e+00> : vector<8x32xf32>
    %108 = tpu.matmul %105, %107, %cst_76 {dimension_numbers = #tpu.dot_dimension_numbers<[1], [0], [0], [1], [0, 0, 1, 1], [], []>} : vector<8x16xf32>, vector<16x32xf32>, vector<8x32xf32> -> vector<8x32xf32>
    %c0_77 = arith.constant 0 : index
    %c7 = arith.constant 7 : index
    %c0_78 = arith.constant 0 : index
    %109 = vector.load %arg1[%c0_77, %c7, %c0_78] : memref<8x8x32xf32, #tpu.memory_space<vmem>>, vector<8x1x32xf32>
    %110 = vector.shape_cast %109 : vector<8x1x32xf32> to vector<8x32xf32>
    %cst_79 = arith.constant dense<0.000000e+00> : vector<8x32xf32>
    %111 = tpu.matmul %110, %0, %cst_79 {dimension_numbers = #tpu.dot_dimension_numbers<[1], [0], [0], [1], [0, 0, 1, 1], [], []>} : vector<8x32xf32>, vector<32x32xf32>, vector<8x32xf32> -> vector<8x32xf32>
    %112 = vector.broadcast %1 : vector<1x32xf32> to vector<8x32xf32>
    %113 = arith.addf %111, %112 : vector<8x32xf32>
    %cst_80 = arith.constant 0.000000e+00 : f32
    %114 = vector.broadcast %cst_80 : f32 to vector<8x32xf32>
    %115 = arith.maximumf %113, %114 : vector<8x32xf32>
    %cst_81 = arith.constant dense<0.000000e+00> : vector<8x16xf32>
    %116 = tpu.matmul %115, %2, %cst_81 {dimension_numbers = #tpu.dot_dimension_numbers<[1], [0], [0], [1], [0, 0, 1, 1], [], []>} : vector<8x32xf32>, vector<32x16xf32>, vector<8x16xf32> -> vector<8x16xf32>
    %117 = vector.broadcast %3 : vector<1x16xf32> to vector<8x16xf32>
    %118 = arith.addf %116, %117 : vector<8x16xf32>
    %cst_82 = arith.constant 0.000000e+00 : f32
    %119 = vector.broadcast %cst_82 : f32 to vector<8x16xf32>
    %120 = arith.maximumf %118, %119 : vector<8x16xf32>
    %c7_83 = arith.constant 7 : index
    %c0_84 = arith.constant 0 : index
    %c0_85 = arith.constant 0 : index
    %121 = vector.load %arg6[%c7_83, %c0_84, %c0_85] : memref<8x16x32xf32, #tpu.memory_space<vmem>>, vector<1x16x32xf32>
    %122 = vector.shape_cast %121 : vector<1x16x32xf32> to vector<16x32xf32>
    %cst_86 = arith.constant dense<0.000000e+00> : vector<8x32xf32>
    %123 = tpu.matmul %120, %122, %cst_86 {dimension_numbers = #tpu.dot_dimension_numbers<[1], [0], [0], [1], [0, 0, 1, 1], [], []>} : vector<8x16xf32>, vector<16x32xf32>, vector<8x32xf32> -> vector<8x32xf32>
    %124 = arith.addf %18, %33 : vector<8x32xf32>
    %125 = arith.addf %48, %63 : vector<8x32xf32>
    %126 = arith.addf %78, %93 : vector<8x32xf32>
    %127 = arith.addf %108, %123 : vector<8x32xf32>
    %128 = arith.addf %124, %125 : vector<8x32xf32>
    %129 = arith.addf %126, %127 : vector<8x32xf32>
    %130 = arith.addf %128, %129 : vector<8x32xf32>
    %c0_87 = arith.constant 0 : index
    %c0_88 = arith.constant 0 : index
    %131 = vector.load %arg7[%c0_87, %c0_88] : memref<1x32xf32, #tpu.memory_space<vmem>>, vector<1x32xf32>
    %132 = vector.broadcast %131 : vector<1x32xf32> to vector<8x32xf32>
    %133 = arith.addf %130, %132 : vector<8x32xf32>
    %cst_89 = arith.constant 0.000000e+00 : f32
    %134 = vector.broadcast %cst_89 : f32 to vector<8x32xf32>
    %135 = arith.maximumf %133, %134 : vector<8x32xf32>
    %c0_90 = arith.constant 0 : index
    %c0_91 = arith.constant 0 : index
    %136 = vector.load %arg8[%c0_90, %c0_91] : memref<32x8xf32, #tpu.memory_space<vmem>>, vector<32x8xf32>
    %cst_92 = arith.constant dense<0.000000e+00> : vector<8x8xf32>
    %137 = tpu.matmul %135, %136, %cst_92 {dimension_numbers = #tpu.dot_dimension_numbers<[1], [0], [0], [1], [0, 0, 1, 1], [], []>} : vector<8x32xf32>, vector<32x8xf32>, vector<8x8xf32> -> vector<8x8xf32>
    %c0_93 = arith.constant 0 : index
    %c0_94 = arith.constant 0 : index
    %138 = vector.load %arg9[%c0_93, %c0_94] : memref<1x8xf32, #tpu.memory_space<vmem>>, vector<1x8xf32>
    %139 = vector.broadcast %138 : vector<1x8xf32> to vector<8x8xf32>
    %140 = arith.addf %137, %139 : vector<8x8xf32>
    %cst_95 = arith.constant dense<0xFF800000> : vector<8xf32>
    %141 = vector.multi_reduction <maximumf>, %140, %cst_95 [1] : vector<8x8xf32> to vector<8xf32>
    %142 = vector.shape_cast %141 : vector<8xf32> to vector<8x1xf32>
    %143 = vector.broadcast %142 : vector<8x1xf32> to vector<8x8xf32>
    %144 = arith.subf %140, %143 : vector<8x8xf32>
    %145 = math.exp %144 : vector<8x8xf32>
    %cst_96 = arith.constant dense<0.000000e+00> : vector<8xf32>
    %146 = vector.multi_reduction <add>, %145, %cst_96 [1] : vector<8x8xf32> to vector<8xf32>
    %147 = vector.shape_cast %146 : vector<8xf32> to vector<8x1xf32>
    %148 = tpu.reciprocal %147 {approx = true} : vector<8x1xf32> -> vector<8x1xf32>
    %149 = arith.mulf %147, %148 : vector<8x1xf32>
    %cst_97 = arith.constant 2.000000e+00 : f32
    %150 = vector.broadcast %cst_97 : f32 to vector<8x1xf32>
    %151 = arith.subf %150, %149 : vector<8x1xf32>
    %152 = arith.mulf %148, %151 : vector<8x1xf32>
    %153 = vector.broadcast %152 : vector<8x1xf32> to vector<8x8xf32>
    %154 = arith.mulf %145, %153 : vector<8x8xf32>
    %c0_98 = arith.constant 0 : index
    %c0_99 = arith.constant 0 : index
    %155 = vector.load %arg10[%c0_98, %c0_99] : memref<8x8xf32, #tpu.memory_space<vmem>>, vector<8x8xf32>
    tpu.vector_store %arg10[%c0_98, %c0_99], %154 {strides = array<i32>} : memref<8x8xf32, #tpu.memory_space<vmem>>, vector<8x8xf32>,
    return
  }
  func.func @transform_0(%arg0: i32) -> (i32, i32, i32) {
    %c0_i32 = arith.constant 0 : i32
    %c0_i32_0 = arith.constant 0 : i32
    %c0_i32_1 = arith.constant 0 : i32
    return %arg0, %c0_i32, %c0_i32_0 : i32, i32, i32
  }
  func.func @transform_1(%arg0: i32) -> (i32, i32) {
    %c0_i32 = arith.constant 0 : i32
    %c0_i32_0 = arith.constant 0 : i32
    %c0_i32_1 = arith.constant 0 : i32
    return %c0_i32, %c0_i32_0 : i32, i32
  }
  func.func @transform_2(%arg0: i32) -> (i32, i32) {
    %c0_i32 = arith.constant 0 : i32
    %c0_i32_0 = arith.constant 0 : i32
    %c0_i32_1 = arith.constant 0 : i32
    return %c0_i32, %c0_i32_0 : i32, i32
  }
  func.func @transform_3(%arg0: i32) -> (i32, i32) {
    %c0_i32 = arith.constant 0 : i32
    %c0_i32_0 = arith.constant 0 : i32
    %c0_i32_1 = arith.constant 0 : i32
    return %c0_i32, %c0_i32_0 : i32, i32
  }
  func.func @transform_4(%arg0: i32) -> (i32, i32) {
    %c0_i32 = arith.constant 0 : i32
    %c0_i32_0 = arith.constant 0 : i32
    %c0_i32_1 = arith.constant 0 : i32
    return %c0_i32, %c0_i32_0 : i32, i32
  }
  func.func @transform_5(%arg0: i32) -> (i32, i32, i32) {
    %c0_i32 = arith.constant 0 : i32
    %c0_i32_0 = arith.constant 0 : i32
    %c0_i32_1 = arith.constant 0 : i32
    %c0_i32_2 = arith.constant 0 : i32
    return %c0_i32, %c0_i32_0, %c0_i32_1 : i32, i32, i32
  }
  func.func @transform_6(%arg0: i32) -> (i32, i32) {
    %c0_i32 = arith.constant 0 : i32
    %c0_i32_0 = arith.constant 0 : i32
    %c0_i32_1 = arith.constant 0 : i32
    return %c0_i32, %c0_i32_0 : i32, i32
  }
  func.func @transform_7(%arg0: i32) -> (i32, i32) {
    %c0_i32 = arith.constant 0 : i32
    %c0_i32_0 = arith.constant 0 : i32
    %c0_i32_1 = arith.constant 0 : i32
    return %c0_i32, %c0_i32_0 : i32, i32
  }
  func.func @transform_8(%arg0: i32) -> (i32, i32) {
    %c0_i32 = arith.constant 0 : i32
    %c0_i32_0 = arith.constant 0 : i32
    %c0_i32_1 = arith.constant 0 : i32
    return %c0_i32, %c0_i32_0 : i32, i32
  }
  func.func @transform_9(%arg0: i32) -> (i32, i32) {
    %c0_i32 = arith.constant 0 : i32
    %c0_i32_0 = arith.constant 0 : i32
    return %arg0, %c0_i32 : i32, i32
  }
}

</mosaic_0001>

<bundles_post_ra>
// kernel: tpu_custom_call.1
= control target key start
LH: loop header
LB: loop body
LE: loop exit
PB: predicated region body
PF: predicated region fallthrough
CT: control target
= control target key end

     0   :  { %s3265_s30 = smov 0   ;;  %s3267_s10 = smov 0   ;;  %s3729_s0 = inlined_call_operand.vmem [shape: f32[16,9,32], index: 0, kind: input, shape index: {}]   ;;  %s3730_s1 = inlined_call_operand.vmem [shape: f32[32,32], index: 1, kind: input, shape index: {}]   ;;  %s3731_s2 = inlined_call_operand.vmem [shape: f32[1,32], index: 2, kind: input, shape index: {}]   ;;  %s3732_s3 = inlined_call_operand.vmem [shape: f32[32,16], index: 3, kind: input, shape index: {}]   ;;  %s3733_s4 = inlined_call_operand.vmem [shape: f32[1,16], index: 4, kind: input, shape index: {}]   ;;  %s3734_s5 = inlined_call_operand.vmem [shape: f32[8,16,32], index: 5, kind: input, shape index: {}]   ;;  %s3735_s6 = inlined_call_operand.vmem [shape: f32[1,32], index: 6, kind: input, shape index: {}]   ;;  %s3736_s7 = inlined_call_operand.vmem [shape: f32[32,8], index: 7, kind: input, shape index: {}]   ;;  %s3737_s8 = inlined_call_operand.vmem [shape: f32[1,8], index: 8, kind: input, shape index: {}]   ;;  %s3738_s9 = inlined_call_operand.vmem [shape: f32[16,8], index: 9, kind: output, shape index: {}]  }
   0x1   :  { %s3269_s11 = smov 0  }
   0x2 LB: > { %s2621_s12 = sadd.s32 4294967295, %s3210_s11   ;;  %s3282_s13 = sadd.s32 1, %s3210_s11   ;;  %s3210_s11 = sphi %s3269_s11, %s3741_s11   ;;  %s3206_s10 = sphi %s3267_s10, %s3740_s10   ;;  %s3202_s30 = sphi %s3265_s30, %s3739_s30  }
   0x3   : > { %s23_s14 = ssub.s32 %s3210_s11, %s3282_s13  ;;  %s26_s15 = sadd.s32 1, %s3206_s10 }
   0x4   : > { %p24_p0 = scmp.eq.s32.totalorder %s23_s14, 0  ;;  %p33_p1 = scmp.ne.s32.totalorder %s3206_s10, %s3202_s30 }
   0x5   : > { %p34_p2 = scmp.eq.s32.totalorder %s3210_s11, 0  ;;  %p2624_p4 = scmp.ge.s32.totalorder %s3210_s11, 2 }
   0x6   : > { %s3291_s16 = scalar_select %p24_p0, %s3206_s10, %s26_s15  }
   0x7   : > { %p35_p3 = por %p34_p2, %p33_p1  ;;  %277 = sbr.rel (%p2624_p4) target bundleno = 22 (0x16), region = 48 }
   0xe   : > { %280 = sbr.rel (!%p35_p3) target bundleno = 22 (0x16), region = 52  ;;  %s282_s17 = sand.u32 (%p35_p3), 1, %s3206_s10  }
   0xf   : > { %s2678_s18 = sshll.u32 (%p35_p3), %s3210_s11, 7  ;;  %s2625_s19 = sshll.u32 (%p35_p3), %s282_s17, 6 }
  0x10   : > { %s288_s22 = scalar_lea.vmem (%p35_p3), %s3729_s0, %s2678_s18  ;;  %s284_s23 = scalar_lea.vmem (%p35_p3), [#allocation2], %s2625_s19 }
  0x11   : > { %v330_v0 = vld [vmem:[%s288_s22] sm:$0xff] (%p35_p3)  ;;  %v332_v1 = vld [vmem:[%s288_s22 + $0x10] sm:$0xff] (%p35_p3) }
  0x12   : > { %v334_v2 = vld [vmem:[%s288_s22 + $0x20] sm:$0xff] (%p35_p3)  ;;  %331 = vst [vmem:[%s284_s23] sm:$0xff] (%p35_p3), %v330_v0  ;;  %333 = vst [vmem:[%s284_s23 + $0x8] sm:$0xff] (%p35_p3), %v332_v1  ;;  %v336_v3 = vld [vmem:[%s288_s22 + $0x30] sm:$0xff] (%p35_p3) }
  0x13   : > { %335 = vst [vmem:[%s284_s23 + $0x10] sm:$0xff] (%p35_p3), %v334_v2  ;;  %v338_v4 = vld [vmem:[%s288_s22 + $0x40] sm:$0xff] (%p35_p3)  ;;  %v340_v5 = vld [vmem:[%s288_s22 + $0x50] sm:$0xff] (%p35_p3)  ;;  %337 = vst [vmem:[%s284_s23 + $0x18] sm:$0xff] (%p35_p3), %v336_v3 }
  0x14   : > { %339 = vst [vmem:[%s284_s23 + $0x20] sm:$0xff] (%p35_p3), %v338_v4  ;;  %341 = vst [vmem:[%s284_s23 + $0x28] sm:$0xff] (%p35_p3), %v340_v5  ;;  %v342_v6 = vld [vmem:[%s288_s22 + $0x60] sm:$0xff] (%p35_p3)  ;;  %v344_v7 = vld [vmem:[%s288_s22 + $0x70] sm:$0xff] (%p35_p3) }
  0x15   : > { %343 = vst [vmem:[%s284_s23 + $0x30] sm:$0xff] %v342_v6  ;;  %345 = vst [vmem:[%s284_s23 + $0x38] sm:$0xff] %v344_v7 }
  0x16 PF: > { %p2629_p5 = scmp.ge.s32.totalorder %s3210_s11, 1  ;;  %p350_p6 = scmp.lt.s32.totalorder %s3210_s11, 3 }
  0x18   : > { %p351_p7 = pnand %p2629_p5, %p350_p6 }
  0x19   : > { %v396_v8 = vld [vmem:[%s3730_s1] sm:$0xff] (!%p351_p7)  ;;  %v397_v9 = vld [vmem:[%s3730_s1 + $0x8] sm:$0xff] (!%p351_p7)  ;;  %v398_v10 = vld [vmem:[%s3730_s1 + $0x10] sm:$0xff] (!%p351_p7)  ;;  %v3212_v11 = vmov (!%p351_p7), 0.0|0.0   ;;  %vm3213_vm0 = vmmov (!%p351_p7), 0   ;;  %v3214_v14 = vmov (!%p351_p7), 0.0  }
  0x1a   : > { %354 = sbr.rel (%p351_p7) target bundleno = 2157 (0x86d), region = 90  ;;  %3031 = vmatprep.subr.bf16.mxu0 (!%p351_p7), %v3212_v11  ;;  %v3311_v12 = vpack.c.bf16 (!%p351_p7), %v397_v9, %v396_v8  ;;  %v399_v13 = vld [vmem:[%s3730_s1 + $0x18] sm:$0xff] (!%p351_p7)  ;;  %2796 = vmatprep.mubr.msk.f32.mxu0 (!%p351_p7), %vm3213_vm0, %v3214_v14  ;;  %s357_s17 = sand.u32 (!%p351_p7), 1, %s3202_s30   ;;  %v401_v15 = vld [vmem:[%s3732_s3] sm:$0xff] (!%p351_p7)  ;;  %vm429_vm1 = vcmask (!%p351_p7), 1041409   ;;  %vm432_vm2 = vcmask (!%p351_p7), 1042434  }
  0x1b   : > { %s2630_s20 = sshll.u32 (!%p351_p7), %s357_s17, 6  ;;  %3037 = vmatprep.subr.bf16.mxu1 (!%p351_p7), %v3212_v11  ;;  %v402_v16 = vld [vmem:[%s3732_s3 + $0x8] sm:$0xff] (!%p351_p7)  ;;  %2807 = vmatprep.mubr.msk.f32.mxu1 (!%p351_p7), %vm3213_vm0, %v3214_v14  ;;  %v3329_v17 = vpack.c.bf16 (!%p351_p7), %v399_v13, %v398_v10  ;;  %vm435_vm3 = vcmask (!%p351_p7), 1043459   ;;  %vm438_vm4 = vcmask (!%p351_p7), 1044484   ;;  %vm441_vm5 = vcmask (!%p351_p7), 1045509   ;;  %v403_v63 = vld [vmem:[%s3732_s3 + $0x10] sm:$0xff] (!%p351_p7) }
  0x1c   : > { %3033 = vmatpush3.bf16.msra.mxu0 (!%p351_p7), %v3311_v12  ;;  %v3331_v18 = vpack.c.bf16 (!%p351_p7), %v402_v16, %v401_v15  ;;  %s3334_s30 = scalar_lea.vmem (!%p351_p7), [#allocation2], %s2630_s20  ;;  %vm444_vm6 = vcmask (!%p351_p7), 1046534   ;;  %vm447_vm7 = vcmask (!%p351_p7), 1047559   ;;  %vm449_vm8 = vcmask (!%p351_p7), 261120   ;;  %v404_v0 = vld [vmem:[%s3732_s3 + $0x18] sm:$0xff] (!%p351_p7)  ;;  %v2638_v13 = vld [vmem:[%s3734_s5 + $0x10] sm:$0xff] (!%p351_p7) }
  0x1d   : > { %3034 = vmatprep.subr.bf16.mxu0 (!%p351_p7), %v3212_v11  ;;  %v406_v19 = vld [vmem:[%s3334_s30] sm:$0x1] (!%p351_p7)  ;;  %v407_v20 = vld [vmem:[%s3334_s30 + $0x8] sm:$0x1] (!%p351_p7)  ;;  %v408_v21 = vld [vmem:[%s3334_s30 + $0x10] sm:$0x1] (!%p351_p7)  ;;  %v3388_v1 = vpack.c.bf16 (!%p351_p7), %v404_v0, %v403_v63 }
  0x1e   : > { %v409_v22 = vld [vmem:[%s3334_s30 + $0x18] sm:$0x1] (!%p351_p7)  ;;  %v410_v23 = vld [vmem:[%s3334_s30 + $0x20] sm:$0x1] (!%p351_p7)  ;;  %v411_v24 = vld [vmem:[%s3334_s30 + $0x28] sm:$0x1] (!%p351_p7)  ;;  %3039 = vmatpush3.bf16.msra.mxu1 (!%p351_p7), %v3331_v18 }
  0x1f   : > { %v412_v25 = vld [vmem:[%s3334_s30 + $0x30] sm:$0x1] (!%p351_p7)  ;;  %v428_v26 = vrot.slane (!%p351_p7), %v407_v20, 7  ;;  %v431_v27 = vrot.slane (!%p351_p7), %v408_v21, 6  ;;  %3040 = vmatprep.subr.bf16.mxu1 (!%p351_p7), %v3212_v11  ;;  %v413_v28 = vld [vmem:[%s3334_s30 + $0x38] sm:$0x1] (!%p351_p7) }
  0x20   : > { %3036 = vmatpush3.bf16.msra.mxu0 (!%p351_p7), %v3329_v17  ;;  %v434_v29 = vrot.slane (!%p351_p7), %v409_v22, 5  ;;  %v437_v30 = vrot.slane (!%p351_p7), %v410_v23, 4  ;;  %v440_v31 = vrot.slane (!%p351_p7), %v411_v24, 3  ;;  %v443_v32 = vrot.slane (!%p351_p7), %v412_v25, 2  ;;  %v605_v34 = vld [vmem:[%s3334_s30 + $0x1] sm:$0x1] (!%p351_p7) }
  0x21   : > { %3043 = vmatprep.subr.bf16.mxu0 %v3212_v11  ;;  %v430_v33 = vsel %vm429_vm1, %v428_v26, %v406_v19  ;;  %v606_v35 = vld [vmem:[%s3334_s30 + $0x9] sm:$0x1]  ;;  %v607_v36 = vld [vmem:[%s3334_s30 + $0x11] sm:$0x1]  ;;  %v608_v38 = vld [vmem:[%s3334_s30 + $0x19] sm:$0x1] }
  0x22   : > { %v433_v37 = vsel %vm432_vm2, %v431_v27, %v430_v33  ;;  %v609_v39 = vld [vmem:[%s3334_s30 + $0x21] sm:$0x1]  ;;  %v610_v40 = vld [vmem:[%s3334_s30 + $0x29] sm:$0x1]  ;;  %v446_v42 = vrot.slane %v413_v28, 1  ;;  %v621_v44 = vrot.slane %v606_v35, 7  ;;  %3042 = vmatpush3.bf16.msra.mxu1 %v3388_v1 }
  0x23   : > { %v436_v41 = vsel %vm435_vm3, %v434_v29, %v433_v37  ;;  %v611_v43 = vld [vmem:[%s3334_s30 + $0x31] sm:$0x1]  ;;  %v623_v45 = vrot.slane %v607_v36, 6  ;;  %v625_v47 = vrot.slane %v608_v38, 5  ;;  %v627_v48 = vrot.slane %v609_v39, 4  ;;  %3049 = vmatprep.subr.bf16.mxu1 %v3212_v11  ;;  %v2639_v15 = vld [vmem:[%s3734_s5 + $0x18] sm:$0xff] }
  0x24   : > { %v439_v46 = vsel %vm438_vm4, %v437_v30, %v436_v41  ;;  %v622_v50 = vsel %vm429_vm1, %v621_v44, %v605_v34  ;;  %v629_v51 = vrot.slane %v610_v40, 3  ;;  %v612_v53 = vld [vmem:[%s3334_s30 + $0x39] sm:$0x1]  ;;  %v631_v55 = vrot.slane %v611_v43, 2  ;;  %v3397_v2 = vld [vmem:[%s3731_s2] ss:$0 sm:$0xff] }
  0x25   : > { %v442_v49 = vsel %vm441_vm5, %v440_v31, %v439_v46  ;;  %v624_v54 = vsel %vm432_vm2, %v623_v45, %v622_v50  ;;  %v633_v60 = vrot.slane %v612_v53, 1  ;;  %v3056_v16 = vpack.c.bf16 %v2639_v15, %v2638_v13  ;;  %v860_v19 = vld [vmem:[%s3334_s30 + $0xa] sm:$0x1]  ;;  %v861_v20 = vld [vmem:[%s3334_s30 + $0x12] sm:$0x1]  ;;  %p392_p8 = scmp.lt.s32.totalorder %s2621_s12, 1 }
  0x26   : > { %v445_v52 = vsel %vm444_vm6, %v443_v32, %v442_v49  ;;  %v626_v57 = vsel %vm435_vm3, %v625_v47, %v624_v54  ;;  %v875_v21 = vrot.slane %v860_v19, 7  ;;  %v859_v22 = vld [vmem:[%s3334_s30 + $0x2] sm:$0x1]  ;;  %v862_v23 = vld [vmem:[%s3334_s30 + $0x1a] sm:$0x1]  ;;  %v877_v24 = vrot.slane %v861_v20, 6 }
  0x27   : > { %v448_v56 = vsel %vm447_vm7, %v446_v42, %v445_v52  ;;  %v628_v58 = vsel %vm438_vm4, %v627_v48, %v626_v57  ;;  %v1040_v28 = vld [vmem:[%s3334_s30 + $0xb] sm:$0x1]  ;;  %v863_v29 = vld [vmem:[%s3334_s30 + $0x22] sm:$0x1]  ;;  %v879_v30 = vrot.slane %v862_v23, 5  ;;  %vm785_vm9 = vcmask 130048  }
  0x28   : > { %2797 = vmatmul.mubr.msk.f32.vlgmr.msra.gmra.mrb[0].mxu0 %vm449_vm8, %v448_v56  ;;  %v630_v59 = vsel %vm441_vm5, %v629_v51, %v628_v58  ;;  %v876_v26 = vsel %vm429_vm1, %v875_v21, %v859_v22  ;;  %v1041_v32 = vld [vmem:[%s3334_s30 + $0x13] sm:$0x1]  ;;  %v1055_v33 = vrot.slane %v1040_v28, 7  ;;  %v864_v34 = vld [vmem:[%s3334_s30 + $0x2a] sm:$0x1]  ;;  %v881_v35 = vrot.slane %v863_v29, 4 }
  0x29   : > { %3045 = vmatpush3.bf16.msra.mxu0 %v3311_v12  ;;  %2818 = vmatprep.mubr.msk.f32.mxu0 %vm3213_vm0, %v3214_v14  ;;  %v632_v61 = vsel %vm444_vm6, %v631_v55, %v630_v59  ;;  %v878_v31 = vsel %vm432_vm2, %v877_v24, %v876_v26  ;;  %v1039_v36 = vld [vmem:[%s3334_s30 + $0x3] sm:$0x1]  ;;  %v1042_v38 = vld [vmem:[%s3334_s30 + $0x1b] sm:$0x1]  ;;  %v1057_v39 = vrot.slane %v1041_v32, 6  ;;  %v883_v43 = vrot.slane %v864_v34, 3 }
  0x2a   : > { %3046 = vmatprep.subr.bf16.mxu0 %v3212_v11  ;;  %v634_v62 = vsel %vm447_vm7, %v633_v60, %v632_v61  ;;  %v880_v37 = vsel %vm435_vm3, %v879_v30, %v878_v31  ;;  %v3436_v40 = vld [vmem:[%s3733_s4] ss:$0 sm:$0xff]  ;;  %v865_v42 = vld [vmem:[%s3334_s30 + $0x32] sm:$0x1]  ;;  %v1056_v44 = vsel %vm429_vm1, %v1055_v33, %v1039_v36  ;;  %v1043_v48 = vld [vmem:[%s3334_s30 + $0x23] sm:$0x1] }
  0x2b   : > { %v882_v47 = vsel %vm438_vm4, %v881_v35, %v880_v37  ;;  %v1059_v49 = vrot.slane %v1042_v38, 5  ;;  %v866_v51 = vld [vmem:[%s3334_s30 + $0x3a] sm:$0x1]  ;;  %v885_v52 = vrot.slane %v865_v42, 2  ;;  %v1058_v53 = vsel %vm432_vm2, %v1057_v39, %v1056_v44  ;;  %v1044_v55 = vld [vmem:[%s3334_s30 + $0x2b] sm:$0x1] }
  0x2c   : > { %v884_v54 = vsel %vm441_vm5, %v883_v43, %v882_v47  ;;  %v1061_v56 = vrot.slane %v1043_v48, 4  ;;  %v887_v57 = vrot.slane %v866_v51, 1  ;;  %v1045_v60 = vld [vmem:[%s3334_s30 + $0x33] sm:$0x1]  ;;  %v1063_v61 = vrot.slane %v1044_v55, 3  ;;  %s3743_s12 = smov (!%p392_p8, %s2621_s12), 1 }
  0x2d   : > { %3048 = vmatpush3.bf16.msra.mxu0 %v3329_v17  ;;  %v1060_v58 = vsel %vm435_vm3, %v1059_v49, %v1058_v53  ;;  %v886_v59 = vsel %vm444_vm6, %v885_v52, %v884_v54  ;;  %v1046_v0 = vld [vmem:[%s3334_s30 + $0x3b] sm:$0x1]  ;;  %v1294_v13 = vld [vmem:[%s3334_s30 + $0x14] sm:$0x1]  ;;  %v1295_v19 = vld [vmem:[%s3334_s30 + $0x1c] sm:$0x1] }
  0x2e   : > { %3064 = vmatprep.subr.bf16.mxu0 %v3212_v11  ;;  %v888_v63 = vsel %vm447_vm7, %v887_v57, %v886_v59  ;;  %v1310_v20 = vrot.slane %v1294_v13, 6  ;;  %v1473_v26 = vld [vmem:[%s3334_s30 + $0xd] sm:$0x1]  ;;  %v1312_v28 = vrot.slane %v1295_v19, 5  ;;  %v1474_v31 = vld [vmem:[%s3334_s30 + $0x15] sm:$0x1] }
  0x2f   : > { %v1488_v32 = vrot.slane %v1473_v26, 7  ;;  %v1297_v33 = vld [vmem:[%s3334_s30 + $0x2c] sm:$0x1]  ;;  %v1472_v35 = vld [vmem:[%s3334_s30 + $0x5] sm:$0x1]  ;;  %v1490_v38 = vrot.slane %v1474_v31, 6 }
  0x30   : > { %2819 = vmatmul.mubr.msk.f32.vlgmr.msra.gmra.mrb[2].mxu0 %vm449_vm8, %v634_v62  ;;  %v1062_v62 = vsel %vm438_vm4, %v1061_v56, %v1060_v58  ;;  %v1475_v37 = vld [vmem:[%s3334_s30 + $0x1d] sm:$0x1]  ;;  %v1316_v42 = vrot.slane %v1297_v33, 3  ;;  %v1476_v47 = vld [vmem:[%s3334_s30 + $0x25] sm:$0x1]  ;;  %vm2546_vm10 = vcmask 64512  }
  0x31   : > { %3066 = vmatpush3.bf16.msra.mxu0 %v3331_v18  ;;  %2858 = vmatprep.mubr.msk.f32.mxu0 %vm3213_vm0, %v3214_v14  ;;  %v1489_v43 = vsel %vm429_vm1, %v1488_v32, %v1472_v35  ;;  %v1492_v48 = vrot.slane %v1475_v37, 5  ;;  %v1477_v54 = vld [vmem:[%s3334_s30 + $0x2d] sm:$0x1]  ;;  %v1494_v55 = vrot.slane %v1476_v47, 4  ;;  %v1478_v59 = vld [vmem:[%s3334_s30 + $0x35] sm:$0x1] }
  0x32   : > { %3067 = vmatprep.subr.bf16.mxu0 %v3212_v11  ;;  %v1491_v52 = vsel %vm432_vm2, %v1490_v38, %v1489_v43  ;;  %v1725_v26 = vld [vmem:[%s3334_s30 + $0x6] sm:$0x1]  ;;  %v1906_v33 = vld [vmem:[%s3334_s30 + $0xf] sm:$0x1]  ;;  %v1907_v38 = vld [vmem:[%s3334_s30 + $0x17] sm:$0x1] }
  0x33   : > { %v1493_v57 = vsel %vm435_vm3, %v1492_v48, %v1491_v52  ;;  %v1905_v43 = vld [vmem:[%s3334_s30 + $0x7] sm:$0x1]  ;;  %v1731_v48 = vld [vmem:[%s3334_s30 + $0x36] sm:$0x1]  ;;  %s2631_s27 = sshll.u32 %s3743_s12, 3 }
  0x34   : > { %s395_s14 = scalar_lea.vmem %s3738_s9, %s2631_s27 }
  0x35   : > { %3069 = vmatpush3.bf16.msra.mxu0 %v3388_v1 }
  0x36   : > { %3076 = vmatprep.subr.bf16.mxu0 %v3212_v11 }
  0xfb   : > { %v518_v3 = vpop.f32.mrb[0].mxu0 }
  0xfc   : > { %v519_v4 = vadd.f32 %v3397_v2, %v518_v3  ;;  %v2798_v5 = vpop.f32.mrb[1].mxu0  ;;  %v1065_v3 = vrot.slane %v1045_v60, 2  ;;  %v1496_v60 = vrot.slane %v1477_v54, 3  ;;  %v1909_v54 = vld [vmem:[%s3334_s30 + $0x27] sm:$0x1] }
  0xfd   : > { %v1067_v5 = vrot.slane %v1046_v0, 1  ;;  %v1498_v0 = vrot.slane %v1478_v59, 2 }
  0xfe   : > { %v522_v6 = vmax.f32 %v519_v4, 0.0  ;;  %v1064_v4 = vsel %vm441_vm5, %v1063_v61, %v1062_v62  ;;  %v1495_v61 = vsel %vm438_vm4, %v1494_v55, %v1493_v57  ;;  %v1732_v57 = vld [vmem:[%s3334_s30 + $0x3e] sm:$0x1] }
 0x100   : > { %2808 = vmatmul.mubr.msk.f32.vlgmr.msra.gmra.mrb[0].mxu1 %vm449_vm8, %v522_v6  ;;  %v1066_v6 = vsel %vm444_vm6, %v1065_v3, %v1064_v4  ;;  %v1497_v3 = vsel %vm441_vm5, %v1496_v60, %v1495_v61  ;;  %v1910_v61 = vld [vmem:[%s3334_s30 + $0x2f] sm:$0x1] }
 0x101   : > { %3051 = vmatpush3.bf16.msra.mxu1 %v3331_v18  ;;  %2829 = vmatprep.mubr.msk.f32.mxu1 %vm3213_vm0, %v3214_v14 }
 0x102   : > { %3052 = vmatprep.subr.bf16.mxu1 %v3212_v11 }
 0x103   : > { %v703_v7 = vpop.f32.mrb[2].mxu0 }
 0x104   : > { %v704_v8 = vadd.f32 %v3397_v2, %v703_v7  ;;  %v2820_v9 = vpop.f32.mrb[3].mxu0  ;;  %v1068_v7 = vsel %vm447_vm7, %v1067_v5, %v1066_v6  ;;  %v1499_v5 = vsel %vm444_vm6, %v1498_v0, %v1497_v3 }
 0x105   : > { %3054 = vmatpush3.bf16.msra.mxu1 %v3388_v1 }
 0x106   : > { %v707_v10 = vmax.f32 %v704_v8, 0.0  ;;  %3055 = vmatprep.subr.bf16.mxu1 %v3212_v11 }
 0x108   : > { %2830 = vmatmul.mubr.msk.f32.vlgmr.msra.gmra.mrb[2].mxu1 %vm449_vm8, %v707_v10  ;;  %v1293_v10 = vld [vmem:[%s3334_s30 + $0xc] sm:$0x1] }
 0x109   : > { %2836 = vmatprep.mubr.msk.f32.mxu1 %vm3213_vm0, %v3214_v14  ;;  %3057 = vmatpush3.bf16.msra.mxu1 %v3056_v16  ;;  %v1308_v15 = vrot.slane %v1293_v10, 7  ;;  %v1292_v16 = vld [vmem:[%s3334_s30 + $0x4] sm:$0x1] }
 0x10a   : > { %3058 = vmatprep.subr.bf16.mxu1 %v3212_v11 }
 0x10b   : > { %v1309_v22 = vsel %vm429_vm1, %v1308_v15, %v1292_v16 }
 0x10c   : > { %v1311_v30 = vsel %vm432_vm2, %v1310_v20, %v1309_v22 }
 0x10d   : > { %v1313_v36 = vsel %vm435_vm3, %v1312_v28, %v1311_v30 }
 0x1d3   : > { %v3422_v25 = vpop.f32.mrb[0].mxu1 }
 0x1d4   : > { %v2809_v27 = vpop.f32.mrb[1].mxu1 }
 0x1d5   : > { %v1296_v27 = vld [vmem:[%s3334_s30 + $0x24] sm:$0x1] }
 0x1d6   : > { %v1314_v34 = vrot.slane %v1296_v27, 4  ;;  %v1728_v27 = vld [vmem:[%s3334_s30 + $0x1e] sm:$0x1] }
 0x1d7   : > { %v1745_v35 = vrot.slane %v1728_v27, 5 }
 0x1db   : > { %v777_v41 = vpop.f32.mrb[2].mxu1 }
 0x1dc   : > { %v778_v45 = vadd.f32 %v3436_v40, %v777_v41  ;;  %v2831_v46 = vpop.f32.mrb[3].mxu1  ;;  %v1298_v41 = vld [vmem:[%s3334_s30 + $0x34] sm:$0x1] }
 0x1dd   : > { %v1315_v46 = vsel %vm438_vm4, %v1314_v34, %v1313_v36  ;;  %v1318_v51 = vrot.slane %v1298_v41, 2  ;;  %v1729_v34 = vld [vmem:[%s3334_s30 + $0x26] sm:$0x1]  ;;  %v1730_v41 = vld [vmem:[%s3334_s30 + $0x2e] sm:$0x1] }
 0x1de   : > { %v781_v50 = vmax.f32 %v778_v45, 0.0  ;;  %v1317_v53 = vsel %vm441_vm5, %v1316_v42, %v1315_v46  ;;  %v1747_v42 = vrot.slane %v1729_v34, 4  ;;  %v1923_v46 = vrot.slane %v1907_v38, 6 }
 0x1df   : > { %v1319_v58 = vsel %vm444_vm6, %v1318_v51, %v1317_v53 }
 0x1e0   : > { %2837 = vmatmul.mubr.msk.f32.vlgmr.msra.gmra.mrb[4].mxu1 %vm785_vm9, %v781_v50  ;;  %v1299_v50 = vld [vmem:[%s3334_s30 + $0x3c] sm:$0x1] }
 0x1e1   : > { %3060 = vmatpush3.bf16.msra.mxu1 %v3311_v12  ;;  %2847 = vmatprep.mubr.msk.f32.mxu1 %vm3213_vm0, %v3214_v14  ;;  %v1320_v56 = vrot.slane %v1299_v50, 1 }
 0x1e2   : > { %3061 = vmatprep.subr.bf16.mxu1 %v3212_v11 }
 0x1e3   : > { %v1321_v62 = vsel %vm447_vm7, %v1320_v56, %v1319_v58  ;;  %v1751_v58 = vrot.slane %v1731_v48, 2 }
 0x1e5   : > { %3063 = vmatpush3.bf16.msra.mxu1 %v3329_v17 }
 0x1e6   : > { %3070 = vmatprep.subr.bf16.mxu1 %v3212_v11 }
 0x1e8   : > { %2848 = vmatmul.mubr.msk.f32.vlgmr.msra.gmra.mrb[6].mxu1 %vm449_vm8, %v888_v63  ;;  %v1479_v63 = vld [vmem:[%s3334_s30 + $0x3d] sm:$0x1] }
 0x1e9   : > { %3072 = vmatpush3.bf16.msra.mxu1 %v3311_v12  ;;  %2869 = vmatprep.mubr.msk.f32.mxu1 %vm3213_vm0, %v3214_v14  ;;  %v1500_v4 = vrot.slane %v1479_v63, 1  ;;  %v1753_v63 = vrot.slane %v1732_v57, 1 }
 0x1ea   : > { %3073 = vmatprep.subr.bf16.mxu1 %v3212_v11 }
 0x1eb   : > { %v1501_v6 = vsel %vm447_vm7, %v1500_v4, %v1499_v5  ;;  %v1911_v4 = vld [vmem:[%s3334_s30 + $0x37] sm:$0x1]  ;;  %v1929_v5 = vrot.slane %v1910_v61, 3  ;;  %v2661_v61 = vld [vmem:[%s3734_s5 + $0x60] sm:$0xff] }
 0x1ed   : > { %3075 = vmatpush3.bf16.msra.mxu1 %v3329_v17 }
 0x1ee   : > { %3082 = vmatprep.subr.bf16.mxu1 %v3212_v11 }
 0x1f0   : > { %2870 = vmatmul.mubr.msk.f32.vlgmr.msra.gmra.mrb[8].mxu1 %vm449_vm8, %v1068_v7  ;;  %v2647_v7 = vld [vmem:[%s3734_s5 + $0x30] sm:$0xff] }
 0x1f1   : > { %2887 = vmatprep.mubr.msk.f32.mxu1 %vm3213_vm0, %v3214_v14 }
 0x2b3   : > { %v3473_v8 = vpop.f32.mrb[4].mxu1 }
 0x2b4   : > { %v2838_v9 = vpop.f32.mrb[5].mxu1 }
 0x2b5   : > { %v2648_v9 = vld [vmem:[%s3734_s5 + $0x38] sm:$0xff] }
 0x2b6   : > { %v3083_v10 = vpack.c.bf16 %v2648_v9, %v2647_v7  ;;  %v1912_v9 = vld [vmem:[%s3334_s30 + $0x3f] sm:$0x1] }
 0x2b8   : > { %3084 = vmatpush3.bf16.msra.mxu1 %v3083_v10  ;;  %v1931_v10 = vrot.slane %v1911_v4, 2 }
 0x2b9   : > { %3091 = vmatprep.subr.bf16.mxu1 %v3212_v11 }
 0x2bb   : > { %v957_v21 = vpop.f32.mrb[6].mxu1 }
 0x2bc   : > { %v958_v23 = vadd.f32 %v3397_v2, %v957_v21  ;;  %v2849_v24 = vpop.f32.mrb[7].mxu1  ;;  %v1726_v21 = vld [vmem:[%s3334_s30 + $0xe] sm:$0x1] }
 0x2bd   : > { %v1741_v24 = vrot.slane %v1726_v21, 7  ;;  %v2657_v21 = vld [vmem:[%s3734_s5 + $0x58] sm:$0xff] }
 0x2be   : > { %v961_v29 = vmax.f32 %v958_v23, 0.0  ;;  %v1727_v23 = vld [vmem:[%s3334_s30 + $0x16] sm:$0x1] }
 0x2bf   : > { %v1743_v28 = vrot.slane %v1727_v23, 6  ;;  %v1742_v30 = vsel %vm429_vm1, %v1741_v24, %v1725_v26 }
 0x2c0   : > { %2859 = vmatmul.mubr.msk.f32.vlgmr.msra.gmra.mrb[4].mxu0 %vm449_vm8, %v961_v29 }
 0x2c1   : > { %3078 = vmatpush3.bf16.msra.mxu0 %v3331_v18  ;;  %2880 = vmatprep.mubr.msk.f32.mxu0 %vm3213_vm0, %v3214_v14  ;;  %v1744_v37 = vsel %vm432_vm2, %v1743_v28, %v1742_v30 }
 0x2c2   : > { %3079 = vmatprep.subr.bf16.mxu0 %v3212_v11 }
 0x2c3   : > { %v1137_v39 = vpop.f32.mrb[8].mxu1 }
 0x2c4   : > { %v1138_v44 = vadd.f32 %v3397_v2, %v1137_v39  ;;  %v2871_v45 = vpop.f32.mrb[9].mxu1  ;;  %v1921_v39 = vrot.slane %v1906_v33, 7 }
 0x2c5   : > { %3081 = vmatpush3.bf16.msra.mxu0 %v3388_v1  ;;  %v1908_v45 = vld [vmem:[%s3334_s30 + $0x1f] sm:$0x1] }
 0x2c6   : > { %v1141_v49 = vmax.f32 %v1138_v44, 0.0  ;;  %3085 = vmatprep.subr.bf16.mxu0 %v3212_v11  ;;  %v1746_v44 = vsel %vm435_vm3, %v1745_v35, %v1744_v37  ;;  %v1922_v50 = vsel %vm429_vm1, %v1921_v39, %v1905_v43  ;;  %v1925_v55 = vrot.slane %v1908_v45, 5  ;;  %v603_v35 = vld [vmem:[%s3734_s5] sm:$0xff] }
 0x2c7   : > { %v1748_v53 = vsel %vm438_vm4, %v1747_v42, %v1746_v44  ;;  %v1924_v59 = vsel %vm432_vm2, %v1923_v46, %v1922_v50  ;;  %v2652_v43 = vld [vmem:[%s3734_s5 + $0x40] sm:$0xff]  ;;  %v2653_v44 = vld [vmem:[%s3734_s5 + $0x48] sm:$0xff]  ;;  %v2665_v46 = vld [vmem:[%s3734_s5 + $0x70] sm:$0xff] }
 0x2c8   : > { %2881 = vmatmul.mubr.msk.f32.vlgmr.msra.gmra.mrb[6].mxu0 %vm449_vm8, %v1141_v49  ;;  %v1749_v49 = vrot.slane %v1730_v41, 3  ;;  %v1926_v0 = vsel %vm435_vm3, %v1925_v55, %v1924_v59  ;;  %v599_v41 = vadd.f32 %v3436_v40, %v3422_v25 }
 0x2c9   : > { %3087 = vmatpush3.bf16.msra.mxu0 %v3311_v12  ;;  %2898 = vmatprep.mubr.msk.f32.mxu0 %vm3213_vm0, %v3214_v14 }
 0x2ca   : > { %3088 = vmatprep.subr.bf16.mxu0 %v3212_v11  ;;  %v1750_v60 = vsel %vm441_vm5, %v1749_v49, %v1748_v53  ;;  %v2643_v53 = vld [vmem:[%s3734_s5 + $0x20] sm:$0xff] }
 0x2cb   : > { %v1752_v3 = vsel %vm444_vm6, %v1751_v58, %v1750_v60 }
 0x2cc   : > { %v1754_v7 = vsel %vm447_vm7, %v1753_v63, %v1752_v3 }
 0x2cd   : > { %3090 = vmatpush3.bf16.msra.mxu0 %v3329_v17 }
 0x2ce   : > { %3097 = vmatprep.subr.bf16.mxu0 %v3212_v11 }
 0x2d0   : > { %2899 = vmatmul.mubr.msk.f32.vlgmr.msra.gmra.mrb[8].mxu0 %vm449_vm8, %v1321_v62  ;;  %v1927_v62 = vrot.slane %v1909_v54, 4  ;;  %v2644_v54 = vld [vmem:[%s3734_s5 + $0x28] sm:$0xff] }
 0x2d1   : > { %3099 = vmatpush3.bf16.msra.mxu0 %v3311_v12  ;;  %2920 = vmatprep.mubr.msk.f32.mxu0 %vm3213_vm0, %v3214_v14  ;;  %v3143_v58 = vpack.c.bf16 %v2644_v54, %v2643_v53 }
 0x2d2   : > { %3100 = vmatprep.subr.bf16.mxu0 %v3212_v11 }
 0x2d5   : > { %3102 = vmatpush3.bf16.msra.mxu0 %v3329_v17 }
 0x2d6   : > { %3109 = vmatprep.subr.bf16.mxu0 %v3212_v11 }
 0x2d8   : > { %2921 = vmatmul.mubr.msk.f32.vlgmr.msra.gmra.mrb[10].mxu0 %vm449_vm8, %v1501_v6  ;;  %v1928_v6 = vsel %vm438_vm4, %v1927_v62, %v1926_v0  ;;  %v2662_v62 = vld [vmem:[%s3734_s5 + $0x68] sm:$0xff] }
 0x2d9   : > { %2938 = vmatprep.mubr.msk.f32.mxu0 %vm3213_vm0, %v3214_v14 }
 0x393   : > { %v3538_v13 = vpop.f32.mrb[4].mxu0 }
 0x394   : > { %v2860_v15 = vpop.f32.mrb[5].mxu0  ;;  %v1032_v59 = vadd.f32 %v3436_v40, %v3538_v13  ;;  %v3149_v13 = vpack.c.bf16 %v2662_v62, %v2661_v61 }
 0x395   : > { %v1930_v15 = vsel %vm441_vm5, %v1929_v5, %v1928_v6 }
 0x396   : > { %v1035_v4 = vmax.f32 %v1032_v59, 0.0 }
 0x39b   : > { %v1211_v16 = vpop.f32.mrb[6].mxu0 }
 0x39c   : > { %v1212_v19 = vadd.f32 %v3436_v40, %v1211_v16  ;;  %v2882_v20 = vpop.f32.mrb[7].mxu0  ;;  %v1933_v16 = vrot.slane %v1912_v9, 1 }
 0x39e   : > { %v1215_v22 = vmax.f32 %v1212_v19, 0.0  ;;  %v1932_v19 = vsel %vm444_vm6, %v1931_v10, %v1930_v15  ;;  %v2462_v10 = vld [vmem:[%s3736_s7] sm:$0xff] }
 0x39f   : > { %v1934_v20 = vsel %vm447_vm7, %v1933_v16, %v1932_v19  ;;  %v2464_v16 = vld [vmem:[%s3736_s7 + $0x10] sm:$0xff] }
 0x3a0   : > { %2888 = vmatmul.mubr.msk.f32.vlgmr.msra.gmra.mrb[10].mxu1 %vm785_vm9, %v1215_v22 }
 0x3a1   : > { %3093 = vmatpush3.bf16.msra.mxu1 %v3331_v18  ;;  %2909 = vmatprep.mubr.msk.f32.mxu1 %vm3213_vm0, %v3214_v14 }
 0x3a2   : > { %3094 = vmatprep.subr.bf16.mxu1 %v3212_v11 }
 0x3a3   : > { %v1390_v29 = vpop.f32.mrb[8].mxu0 }
 0x3a4   : > { %v1391_v31 = vadd.f32 %v3397_v2, %v1390_v29  ;;  %v2900_v32 = vpop.f32.mrb[9].mxu0 }
 0x3a5   : > { %3096 = vmatpush3.bf16.msra.mxu1 %v3388_v1 }
 0x3a6   : > { %v1394_v36 = vmax.f32 %v1391_v31, 0.0  ;;  %3103 = vmatprep.subr.bf16.mxu1 %v3212_v11 }
 0x3a8   : > { %2910 = vmatmul.mubr.msk.f32.vlgmr.msra.gmra.mrb[12].mxu1 %vm449_vm8, %v1394_v36  ;;  %v604_v36 = vld [vmem:[%s3734_s5 + $0x8] sm:$0xff] }
 0x3a9   : > { %3105 = vmatpush3.bf16.msra.mxu1 %v3331_v18  ;;  %2931 = vmatprep.mubr.msk.f32.mxu1 %vm3213_vm0, %v3214_v14 }
 0x3aa   : > { %3106 = vmatprep.subr.bf16.mxu1 %v3212_v11 }
 0x3ab   : > { %v1570_v47 = vpop.f32.mrb[10].mxu0 }
 0x3ac   : > { %v1571_v51 = vadd.f32 %v3397_v2, %v1570_v47  ;;  %v2922_v52 = vpop.f32.mrb[11].mxu0  ;;  %v2666_v47 = vld [vmem:[%s3734_s5 + $0x78] sm:$0xff] }
 0x3ad   : > { %3108 = vmatpush3.bf16.msra.mxu1 %v3388_v1  ;;  %v3137_v48 = vpack.c.bf16 %v2666_v47, %v2665_v46 }
 0x3ae   : > { %v1574_v56 = vmax.f32 %v1571_v51, 0.0  ;;  %3112 = vmatprep.subr.bf16.mxu1 %v3212_v11 }
 0x3b0   : > { %2932 = vmatmul.mubr.msk.f32.vlgmr.msra.gmra.mrb[14].mxu1 %vm449_vm8, %v1574_v56 }
 0x3b1   : > { %3114 = vmatpush3.bf16.msra.mxu1 %v3311_v12  ;;  %2949 = vmatprep.mubr.msk.f32.mxu1 %vm3213_vm0, %v3214_v14 }
 0x3b2   : > { %3115 = vmatprep.subr.bf16.mxu1 %v3212_v11 }
 0x3b5   : > { %3117 = vmatpush3.bf16.msra.mxu1 %v3329_v17 }
 0x3b6   : > { %3124 = vmatprep.subr.bf16.mxu1 %v3212_v11 }
 0x3b8   : > { %2950 = vmatmul.mubr.msk.f32.vlgmr.msra.gmra.mrb[16].mxu1 %vm449_vm8, %v1754_v7 }
 0x3b9   : > { %3126 = vmatpush3.bf16.msra.mxu1 %v3311_v12  ;;  %2971 = vmatprep.mubr.msk.f32.mxu1 %vm3213_vm0, %v3214_v14  ;;  %v2656_v12 = vld [vmem:[%s3734_s5 + $0x50] sm:$0xff] }
 0x3ba   : > { %3127 = vmatprep.subr.bf16.mxu1 %v3212_v11  ;;  %v3110_v22 = vpack.c.bf16 %v2657_v21, %v2656_v12 }
 0x3bc   : > { %3111 = vmatpush3.bf16.msra.mxu0 %v3110_v22 }
 0x3bd   : > { %3129 = vmatpush3.bf16.msra.mxu1 %v3329_v17  ;;  %3118 = vmatprep.subr.bf16.mxu0 %v3212_v11 }
 0x3be   : > { %3136 = vmatprep.subr.bf16.mxu1 %v3212_v11 }
 0x3c0   : > { %2972 = vmatmul.mubr.msk.f32.vlgmr.msra.gmra.mrb[18].mxu1 %vm449_vm8, %v1934_v20 }
 0x3c1   : > { %2989 = vmatprep.mubr.msk.f32.mxu1 %vm3213_vm0, %v3214_v14  ;;  %3138 = vmatpush3.bf16.msra.mxu1 %v3137_v48 }
 0x3c2   : > { %3142 = vmatprep.subr.bf16.mxu1 %v3212_v11 }
 0x473   : > { %v3611_v17 = vpop.f32.mrb[10].mxu1 }
 0x474   : > { %v2889_v23 = vpop.f32.mrb[11].mxu1 }
 0x47b   : > { %v1464_v24 = vpop.f32.mrb[12].mxu1 }
 0x47c   : > { %v2911_v26 = vpop.f32.mrb[13].mxu1  ;;  %v1465_v25 = vadd.f32 %v3436_v40, %v1464_v24 }
 0x47e   : > { %v1468_v45 = vmax.f32 %v1465_v25, 0.0 }
 0x483   : > { %v1644_v27 = vpop.f32.mrb[14].mxu1 }
 0x484   : > { %v1645_v28 = vadd.f32 %v3436_v40, %v1644_v27  ;;  %v2933_v29 = vpop.f32.mrb[15].mxu1 }
 0x485   : > { %v2672_v29 = vld [vmem:[%s3735_s6] ss:$0 sm:$0xff] }
 0x486   : > { %v1648_v30 = vmax.f32 %v1645_v28, 0.0 }
 0x488   : > { %2939 = vmatmul.mubr.msk.f32.vlgmr.msra.gmra.mrb[12].mxu0 %vm785_vm9, %v1648_v30 }
 0x489   : > { %3120 = vmatpush3.bf16.msra.mxu0 %v3331_v18  ;;  %2960 = vmatprep.mubr.msk.f32.mxu0 %vm3213_vm0, %v3214_v14 }
 0x48a   : > { %3121 = vmatprep.subr.bf16.mxu0 %v3212_v11 }
 0x48b   : > { %v1823_v31 = vpop.f32.mrb[16].mxu1 }
 0x48c   : > { %v1824_v32 = vadd.f32 %v3397_v2, %v1823_v31  ;;  %v2951_v33 = vpop.f32.mrb[17].mxu1 }
 0x48d   : > { %3123 = vmatpush3.bf16.msra.mxu0 %v3388_v1  ;;  %v2673_v33 = vld [vmem:[%s3737_s8] ss:$0 sm:$0xff] }
 0x48e   : > { %v1827_v34 = vmax.f32 %v1824_v32, 0.0  ;;  %3130 = vmatprep.subr.bf16.mxu0 %v3212_v11 }
 0x490   : > { %2961 = vmatmul.mubr.msk.f32.vlgmr.msra.gmra.mrb[14].mxu0 %vm449_vm8, %v1827_v34 }
 0x491   : > { %3132 = vmatpush3.bf16.msra.mxu0 %v3331_v18  ;;  %2982 = vmatprep.mubr.msk.f32.mxu0 %vm3213_vm0, %v3214_v14  ;;  %v3140_v18 = vpack.c.bf16 %v604_v36, %v603_v35 }
 0x492   : > { %3133 = vmatprep.subr.bf16.mxu0 %v3212_v11 }
 0x493   : > { %v2003_v37 = vpop.f32.mrb[18].mxu1 }
 0x494   : > { %v2004_v38 = vadd.f32 %v3397_v2, %v2003_v37  ;;  %v2973_v39 = vpop.f32.mrb[19].mxu1  ;;  %v602_v2 = vmax.f32 %v599_v41, 0.0 }
 0x495   : > { %3135 = vmatpush3.bf16.msra.mxu0 %v3388_v1  ;;  %v3146_v1 = vpack.c.bf16 %v2653_v44, %v2652_v43 }
 0x496   : > { %v2007_v42 = vmax.f32 %v2004_v38, 0.0  ;;  %3139 = vmatprep.subr.bf16.mxu0 %v3212_v11 }
 0x498   : > { %2983 = vmatmul.mubr.msk.f32.vlgmr.msra.gmra.mrb[16].mxu0 %vm449_vm8, %v2007_v42 }
 0x499   : > { %3141 = vmatpush3.bf16.msra.mxu0 %v3140_v18  ;;  %2996 = vmatprep.mubr.msk.f32.mxu0 %vm3213_vm0, %v3214_v14 }
 0x49a   : > { %3145 = vmatprep.subr.bf16.mxu0 %v3212_v11 }
 0x49c   : > { %2997 = vmatmul.mubr.msk.f32.vlgmr.msra.gmra.mrb[18].mxu0 %vm785_vm9, %v602_v2 }
 0x49d   : > { %3147 = vmatpush3.bf16.msra.mxu0 %v3146_v1  ;;  %3010 = vmatprep.mubr.msk.f32.mxu0 %vm3213_vm0, %v3214_v14 }
 0x49e   : > { %3151 = vmatprep.subr.bf16.mxu0 %v3212_v11 }
 0x4a0   : > { %3011 = vmatmul.mubr.msk.f32.vlgmr.msra.gmra.mrb[20].mxu0 %vm785_vm9, %v1468_v45 }
 0x4a1   : > { %3028 = vmatprep.mubr.msk.f32.mxu0 %vm3213_vm0, %v3214_v14 }
 0x55b   : > { %v1721_v49 = vpop.f32.mrb[12].mxu0 }
 0x55c   : > { %v2940_v50 = vpop.f32.mrb[13].mxu0 }
 0x563   : > { %v1897_v51 = vpop.f32.mrb[14].mxu0 }
 0x564   : > { %v2962_v52 = vpop.f32.mrb[15].mxu0  ;;  %v1898_v5 = vadd.f32 %v3436_v40, %v1897_v51 }
 0x56b   : > { %v2077_v55 = vpop.f32.mrb[16].mxu0 }
 0x56c   : > { %v2078_v56 = vadd.f32 %v3436_v40, %v2077_v55  ;;  %v2984_v57 = vpop.f32.mrb[17].mxu0  ;;  %v2463_v40 = vld [vmem:[%s3736_s7 + $0x8] sm:$0xff] }
 0x56d   : > { %v3152_v15 = vpack.c.bf16 %v2463_v40, %v2462_v10 }
 0x56e   : > { %v2081_v60 = vmax.f32 %v2078_v56, 0.0 }
 0x56f   : > { %v2227_v63 = vpop.f32.mrb[18].mxu0  ;;  %3153 = vmatpush3.bf16.msra.mxu0 %v3152_v15 }
 0x570   : > { %v2228_v0 = vadd.f32 %v2227_v63, %v3473_v8  ;;  %2990 = vmatmul.mubr.msk.f32.vlgmr.msra.gmra.mrb[20].mxu1 %vm785_vm9, %v2081_v60  ;;  %v2998_v3 = vpop.f32.mrb[19].mxu0  ;;  %v1901_v8 = vmax.f32 %v1898_v5, 0.0  ;;  %3154 = vmatprep.subr.bf16.mxu0 %v3212_v11 }
 0x571   : > { %3144 = vmatpush3.bf16.msra.mxu1 %v3143_v58  ;;  %3003 = vmatprep.mubr.msk.f32.mxu1 %vm3213_vm0, %v3214_v14 }
 0x572   : > { %3148 = vmatprep.subr.bf16.mxu1 %v3212_v11 }
 0x573   : > { %v2373_v6 = vpop.f32.mrb[20].mxu0 }
 0x574   : > { %v2374_v7 = vadd.f32 %v2373_v6, %v1721_v49  ;;  %3004 = vmatmul.mubr.msk.f32.vlgmr.msra.gmra.mrb[22].mxu1 %vm785_vm9, %v1035_v4  ;;  %v3012_v9 = vpop.f32.mrb[21].mxu0 }
 0x575   : > { %3150 = vmatpush3.bf16.msra.mxu1 %v3149_v13  ;;  %3017 = vmatprep.mubr.msk.f32.mxu1 %vm3213_vm0, %v3214_v14  ;;  %v2465_v14 = vld [vmem:[%s3736_s7 + $0x18] sm:$0xff] }
 0x576   : > { %v3155_v19 = vpack.c.bf16 %v2465_v14, %v2464_v16 }
 0x578   : > { %3018 = vmatmul.mubr.msk.f32.vlgmr.msra.gmra.mrb[24].mxu1 %vm785_vm9, %v1901_v8  ;;  %3156 = vmatpush3.bf16.msra.mxu0 %v3155_v19 }
 0x643   : > { %v2154_v20 = vpop.f32.mrb[20].mxu1 }
 0x644   : > { %v2991_v12 = vpop.f32.mrb[21].mxu1 }
 0x647   : > { %v2300_v21 = vpop.f32.mrb[22].mxu1 }
 0x648   : > { %v2301_v22 = vadd.f32 %v2300_v21, %v3611_v17  ;;  %v3005_v23 = vpop.f32.mrb[23].mxu1 }
 0x64a   : > { %v2450_v24 = vadd.f32 %v2301_v22, %v2228_v0 }
 0x64b   : > { %v2446_v26 = vpop.f32.mrb[24].mxu1 }
 0x64c   : > { %v2447_v27 = vadd.f32 %v2446_v26, %v2154_v20  ;;  %v3019_v11 = vpop.f32.mrb[25].mxu1 }
 0x64e   : > { %v2451_v28 = vadd.f32 %v2447_v27, %v2374_v7 }
 0x650   : > { %v2452_v30 = vadd.f32 %v2451_v28, %v2450_v24 }
 0x652   : > { %v2460_v31 = vadd.f32 %v2672_v29, %v2452_v30 }
 0x654   : > { %v2461_v32 = vmax.f32 %v2460_v31, 0.0 }
 0x656   : > { %3029 = vmatmul.mubr.msk.f32.vlgmr.msra.gmra.mrb[22].mxu0 %vm449_vm8, %v2461_v32 }
 0x729   : > { %v2542_v17 = vpop.f32.mrb[22].mxu0 }
 0x72a   : > { %v2543_v34 = vadd.f32 %v2673_v33, %v2542_v17  ;;  %v3030_v35 = vpop.f32.mrb[23].mxu0 }
 0x72c   : > { %v2547_v36 = vsel %vm2546_vm10, %v2543_v34, -inf }
 0x72d   : > { %2548 = vmax.xlane.f32.xlu0 %v2547_v36 }
 0x7ba   : > { %v2549_v37 = vpop.xlane.xlu0 %2548 }
 0x7bb   : > { %v2550_v38 = vsub.f32 %v2543_v34, %v2549_v37 }
 0x7bd   : > { %v2551_v39 = vmul.f32 1.442695, %v2550_v38 }
 0x7bf   : > { %3184 = vpow2.f32 %v2551_v39 }
 0x7c9   : > { %v3185_v18 = vpop.eup %3184 }
 0x7ca   : > { %v2553_v41 = vsel %vm2546_vm10, %v3185_v18, 0.0 }
 0x7cb   : > { %2554 = vadd.xlane.f32.xlu0 %v2553_v41 }
 0x858   : > { %v2555_v42 = vpop.xlane.xlu0 %2554 }
 0x859   : > { %3186 = vrcp.f32 %v2555_v42 }
 0x863   : > { %v3187_v43 = vpop.eup %3186 }
 0x864   : > { %v2557_v44 = vmul.f32 %v3187_v43, %v2555_v42 }
 0x866   : > { %v2558_v1 = vsub.f32 2.0, %v2557_v44 }
 0x868   : > { %v2559_v2 = vmul.f32 %v3187_v43, %v2558_v1 }
 0x86a   : > { %v2560_v25 = vmul.f32 %v3185_v18, %v2559_v2 }
 0x86c   : > { %2561 = vst.msk [vmem:[%s395_s14] sm:$0xff] %vm2546_vm10, %v2560_v25 }
 0x86d PF: > { %p16_p9 = scmp.ge.s32.totalorder %s3282_s13, 4   ;;  %s3739_s30 = smov %s3206_s10 }
 0x86e   : > { %s3740_s10 = smov %s3291_s16  ;;  %s3741_s11 = smov %s3282_s13 }
 0x86f   :  { %18 = sbr.rel (!%p16_p9) target bundleno = 2 (0x2), region = 136 }

</bundles_post_ra>
